<compile_context>
chip_gen: v5e
topology: v5e:2x2
jax: 0.10.0
libtpu: 0.0.40
codegen_flags: <defaults>
</compile_context>

<pallas_src>
import jax
import jax.numpy as jnp
from jax.experimental import pallas as pl
from jax.experimental.pallas import tpu as pltpu

HIDDEN = 128          # stand-in for d_model=256 (multiple of 128 lanes)
IMAGE_HW = 64         # stand-in for the image size implied by _bb_feat_sizes
BB_FEAT_SIZES = [(16, 16), (8, 8), (4, 4), (2, 2)]   # scaled _bb_feat_sizes
NUM_LEVELS = len(BB_FEAT_SIZES)
NUM_MASKS = 3
LANE = 128            # TPU lane width
KP = 8                # per-level K-block (3 rgb + 1 folded bias + 4 pad)
KPACK = NUM_LEVELS * KP                    # 32: packed contraction depth
VMEM_LIMIT_BYTES = 32 * 1024 * 1024        # explicit: safe on v5e/v6e/v7x
TILE_VMEM_BUDGET = 8 * 1024 * 1024         # per-step tile budget (dbl-buffered)


# ----------------------------------------------------------------------------
# Kernel 1: single K-packed encoder projection for all 4 FPN levels
#   out = relu(x_packed @ W_packed), biases folded in via per-level ones col.
#   Weights use a constant index_map -> resident in VMEM, DMA'd once.
# ----------------------------------------------------------------------------
def _encoder_kernel(x_ref, w_ref, o_ref):
    acc = jnp.dot(x_ref[...], w_ref[...], preferred_element_type=jnp.float32)
    o_ref[...] = jnp.maximum(acc, 0.0).astype(o_ref.dtype)   # bf16 writeback


def fused_level_projection(x_packed, w_packed, tm):
    """x_packed: (Mp, KPACK) bf16, w_packed: (KPACK, HIDDEN) bf16 -> (Mp, HIDDEN) bf16."""
    mp, kp = x_packed.shape
    _, n = w_packed.shape
    return pl.pallas_call(
        _encoder_kernel,
        out_shape=jax.ShapeDtypeStruct((mp, n), jnp.bfloat16),
        grid_spec=pltpu.PrefetchScalarGridSpec(
            num_scalar_prefetch=0,
            grid=(mp // tm,),
            in_specs=[
                pl.BlockSpec((tm, kp), lambda i: (i, 0)),
                pl.BlockSpec((kp, n), lambda i: (0, 0)),   # resident weights
            ],
            out_specs=pl.BlockSpec((tm, n), lambda i: (i, 0)),
        ),
        compiler_params=pltpu.CompilerParams(
            dimension_semantics=("parallel",),
            vmem_limit_bytes=VMEM_LIMIT_BYTES),
    )(x_packed, w_packed)


# ----------------------------------------------------------------------------
# Kernel 2: fused decoder head (no HBM round trip of the hidden activation)
#   logits_pad = relu(x @ w0 + b0) @ w1_pad + b1_pad   (w1 padded to 128 cols)
#   b0/b1 travel as one stacked (2, 128) block with a constant index_map.
# ----------------------------------------------------------------------------
def _decoder_kernel(x_ref, w0_ref, bias_ref, w1_ref, o_ref):
    bias = bias_ref[...]                                       # (2, 128) f32
    h = jnp.dot(x_ref[...], w0_ref[...], preferred_element_type=jnp.float32)
    h = jnp.maximum(h + bias[0:1, :], 0.0)
    o = jnp.dot(h.astype(w1_ref.dtype), w1_ref[...],
                preferred_element_type=jnp.float32)
    o_ref[...] = (o + bias[1:2, :]).astype(o_ref.dtype)


def fused_decoder_head(tokens, w0, bias01, w1, tm):
    """tokens: (Mp, HIDDEN) bf16 -> (Mp, LANE) f32 (only first NUM_MASKS cols live)."""
    mp, k = tokens.shape
    h1 = w0.shape[1]
    n = w1.shape[1]
    return pl.pallas_call(
        _decoder_kernel,
        out_shape=jax.ShapeDtypeStruct((mp, n), jnp.float32),
        grid_spec=pltpu.PrefetchScalarGridSpec(
            num_scalar_prefetch=0,
            grid=(mp // tm,),
            in_specs=[
                pl.BlockSpec((tm, k), lambda i: (i, 0)),
                pl.BlockSpec((k, h1), lambda i: (0, 0)),
                pl.BlockSpec((2, h1), lambda i: (0, 0)),   # stacked b0 / b1
                pl.BlockSpec((h1, n), lambda i: (0, 0)),
            ],
            out_specs=pl.BlockSpec((tm, n), lambda i: (i, 0)),
        ),
        compiler_params=pltpu.CompilerParams(
            dimension_semantics=("parallel",),
            vmem_limit_bytes=VMEM_LIMIT_BYTES),
    )(tokens, w0, bias01, w1)


# ----------------------------------------------------------------------------
# Static, VMEM-budget-aware tiling
# ----------------------------------------------------------------------------
def _encoder_tiling(m_total):
    """Pick (tile_rows, padded_M): 2 parallel steps when possible (keeps both
    v7x TensorCores busy) while amortizing the ~600-cycle per-step overhead."""
    if m_total <= 256:
        tm = -(-m_total // 8) * 8
        return tm, tm                                   # grid=(1,)
    half = -(-m_total // 2)
    tm = -(-half // 128) * 128                          # tile rows, 128-aligned
    row_bytes = 2 * 2 * (KPACK + HIDDEN)                # dbl-buffered bf16 in+out
    cap = max(128, (TILE_VMEM_BUDGET // row_bytes) // 128 * 128)
    tm = min(tm, cap)
    mp = -(-m_total // tm) * tm
    return tm, mp


def _decoder_tiling(m):
    mp = -(-m // 8) * 8
    if mp <= 512:
        return mp, mp                                   # grid=(1,)
    tm = 256
    return tm, -(-m // tm) * tm


# ----------------------------------------------------------------------------
# Synthetic image encoder: progressive avg-pool stem + single Pallas matmul
# ----------------------------------------------------------------------------
# TODO(synk): the real image_encoder is an injected Hiera/FPN module not
# defined in the reference source; this is a deterministic stand-in.
def image_encoder(img_batch, params):
    b, cin, h_img, w_img = img_batch.shape
    assert cin + 1 <= KP

    # one NCHW->NHWC transpose at entry; channels-last from here on
    x = img_batch.transpose(0, 2, 3, 1)

    # progressive pooling: full image read once, then 2x downsample per level
    level_tokens, prev_hw, cur = [], (h_img, w_img), x
    for (h, w) in BB_FEAT_SIZES:
        ph, pw = prev_hw
        cur = cur.reshape(b, h, ph // h, w, pw // w, cin).mean(axis=(2, 4))
        prev_hw = (h, w)
        level_tokens.append(cur.reshape(b * h * w, cin))

    # K-packed slab: each level's (rgb + ones) features occupy its own
    # 8-wide K-block; all levels share M tiles (no per-level M padding, no
    # per-tile level dispatch).  One pad per level + one concat.
    blocks, offsets, valid = [], [], []
    off = 0
    for lvl, toks in enumerate(level_tokens):
        m = toks.shape[0]
        blk = jnp.concatenate(
            [toks.astype(jnp.bfloat16), jnp.ones((m, 1), jnp.bfloat16)], axis=1)
        blk = jnp.pad(blk, ((0, 0), (lvl * KP, KPACK - lvl * KP - (cin + 1))))
        blocks.append(blk)
        offsets.append(off)
        valid.append(m)
        off += m
    x_packed = jnp.concatenate(blocks, axis=0)          # (M_total, 32) bf16
    m_total = x_packed.shape[0]
    tm, mp = _encoder_tiling(m_total)
    x_packed = jnp.pad(x_packed, ((0, mp - m_total), (0, 0)))

    proj = fused_level_projection(x_packed, params["enc_w_packed"], tm)

    backbone_fpn, vision_pos_enc = [], []
    for lvl, (h, w) in enumerate(BB_FEAT_SIZES):
        o = proj[offsets[lvl]: offsets[lvl] + valid[lvl]]
        # NCHW features kept only for structural fidelity with the reference
        # forward (feats / _features); they are dead under jit -> DCE'd.
        feat = o.reshape(b, h, w, HIDDEN).transpose(0, 3, 1, 2)
        backbone_fpn.append(feat)
        # positional encodings are discarded by SAM2Base.forward; only their
        # shapes are consumed -> XLA DCEs these zeros under jit.
        vision_pos_enc.append(jnp.zeros_like(feat))

    backbone_out = {"backbone_fpn": backbone_fpn, "vision_pos_enc": vision_pos_enc}
    # channels-last last-level tokens (numerically identical to feats[-1]
    # re-layout) -> live path to the decoder without transpose round trips.
    lh, lw = BB_FEAT_SIZES[-1]
    backbone_out["last_level_tokens"] = proj[offsets[-1]: offsets[-1] + valid[-1]]
    backbone_out["last_level_hw"] = (lh, lw)
    return backbone_out


# ----------------------------------------------------------------------------
# _prepare_backbone_features (port of the reference function)
# ----------------------------------------------------------------------------
def prepare_backbone_features(backbone_out, num_feature_levels=4):
    backbone_out = dict(backbone_out)  # shallow copy, like .copy()
    assert len(backbone_out["backbone_fpn"]) == len(backbone_out["vision_pos_enc"])
    assert len(backbone_out["backbone_fpn"]) >= num_feature_levels
    feature_maps = backbone_out["backbone_fpn"][-num_feature_levels:]
    vision_pos_embeds = backbone_out["vision_pos_enc"][-num_feature_levels:]
    feat_sizes = [(x.shape[-2], x.shape[-1]) for x in vision_pos_embeds]
    # flatten(2).permute(2, 0, 1): (B, C, H, W) -> (HW, B, C)
    vision_feats = [
        x.reshape(x.shape[0], x.shape[1], -1).transpose(2, 0, 1)
        for x in feature_maps]
    vision_pos_embeds = [
        x.reshape(x.shape[0], x.shape[1], -1).transpose(2, 0, 1)
        for x in vision_pos_embeds]
    return backbone_out, vision_feats, vision_pos_embeds, feat_sizes


# ----------------------------------------------------------------------------
# Synthetic mask decoder: fused Pallas MLP head on the image embedding
# ----------------------------------------------------------------------------
# TODO(synk): the real mask_decoder is an injected SAM MaskDecoder
# (TwoWayTransformer) not defined in the reference source; stand-in head.
def mask_decoder(feats, params, tokens_cl, batch_size, hw):
    # tokens_cl are the channels-last rows of the lowest-res level, equal in
    # value to feats[-1].permute(0,2,3,1).reshape(-1, C) -- layout-only change.
    del feats
    h, w = hw
    m = tokens_cl.shape[0]
    tm, mp = _decoder_tiling(m)
    tokens_p = jnp.pad(tokens_cl, ((0, mp - m), (0, 0)))
    logits_pad = fused_decoder_head(
        tokens_p, params["dec_w0"], params["dec_bias01"], params["dec_w1"], tm)
    logits = logits_pad[:m, :NUM_MASKS]                     # real 3 columns
    masks = logits.reshape(batch_size, h, w, NUM_MASKS).transpose(0, 3, 1, 2)
    return masks[:, 0:1], masks[:, 1:2], masks[:, 2:3]


# ----------------------------------------------------------------------------
# SAM2Base.forward
# ----------------------------------------------------------------------------
def sam2_base_forward(img_batch, params):
    batch_size = img_batch.shape[0]
    assert img_batch.ndim == 4 and img_batch.shape[1] == 3, (
        f"img_batch must be of size Bx3xHxW, got {img_batch.shape}")
    backbone_out = image_encoder(img_batch, params)
    _, vision_feats, _, _ = prepare_backbone_features(backbone_out)
    # feat.permute(1, 2, 0).reshape(B, -1, h, w), reversed pairing as in torch
    feats = [
        feat.transpose(1, 2, 0).reshape(batch_size, -1, *feat_size)
        for feat, feat_size in zip(vision_feats[::-1], BB_FEAT_SIZES[::-1])
    ][::-1]
    _features = {"image_embed": feats[-1], "high_res_feats": feats[:-1]}
    del _features  # built (as in reference) but unused by the return value
    mask_1, mask_2, mask_3 = mask_decoder(
        feats, params,
        backbone_out["last_level_tokens"], batch_size,
        backbone_out["last_level_hw"])
    return mask_1, mask_2, mask_3


# ----------------------------------------------------------------------------
# Deterministic parameter construction + driver
# ----------------------------------------------------------------------------
def init_params(key):
    keys = jax.random.split(key, 6)
    # K-packed encoder weights (KPACK=32, HIDDEN):
    #   rows lvl*8+0..2 = that level's RGB weights, row lvl*8+3 = folded bias
    #   (zero here), rows lvl*8+4..7 = zero K padding.
    enc_w = jnp.zeros((KPACK, HIDDEN), jnp.float32)
    for lvl in range(NUM_LEVELS):
        w = 0.1 * jax.random.normal(keys[lvl], (3, HIDDEN), jnp.float32)
        enc_w = enc_w.at[lvl * KP: lvl * KP + 3].set(w)
    params = {"enc_w_packed": enc_w.astype(jnp.bfloat16)}

    params["dec_w0"] = (0.1 * jax.random.normal(
        keys[4], (HIDDEN, HIDDEN), jnp.float32)).astype(jnp.bfloat16)

    w1 = 0.1 * jax.random.normal(keys[5], (HIDDEN, NUM_MASKS), jnp.float32)
    dec_w1 = jnp.zeros((HIDDEN, LANE), jnp.float32).at[:, :NUM_MASKS].set(w1)
    params["dec_w1"] = dec_w1.astype(jnp.bfloat16)   # cols 3..127 are zero pad

    # b0 (row 0) and padded b1 (row 1) stacked -> one resident DMA stream
    params["dec_bias01"] = jnp.zeros((2, LANE), jnp.float32)
    return params


if __name__ == "__main__":
    root = jax.random.PRNGKey(0)
    pkey, xkey = jax.random.split(root)
    params = init_params(pkey)
    img_batch = jax.random.normal(xkey, (2, 3, IMAGE_HW, IMAGE_HW), jnp.float32)

    fwd = jax.jit(sam2_base_forward)
    mask_1, mask_2, mask_3 = fwd(img_batch, params)
    jax.block_until_ready((mask_1, mask_2, mask_3))

    assert mask_1.shape == (2, 1, 2, 2)
    assert mask_2.shape == (2, 1, 2, 2)
    assert mask_3.shape == (2, 1, 2, 2)
    print("KERNEL_OK")
</pallas_src>

<mosaic_0001>
module attributes {stable_mosaic.version = 11 : i64} {
  func.func @_encoder_kernel(%arg0: i32, %arg1: memref<384x32xbf16, #tpu.memory_space<vmem>>, %arg2: memref<32x128xbf16, #tpu.memory_space<vmem>>, %arg3: memref<384x128xbf16, #tpu.memory_space<vmem>>) attributes {dimension_semantics = [#tpu.dimension_semantics<parallel>], iteration_bounds = array<i64: 2>, scalar_prefetch = 0 : i64, scratch_operands = 0 : i64, tpu.core_type = #tpu.core_type<tc>, window_params = [{transform_indices = @transform_0, window_bounds = array<i64: 384, 32>}, {pipeline_mode = #tpu.pipeline_mode<synchronous>, transform_indices = @transform_1, window_bounds = array<i64: 32, 128>}, {transform_indices = @transform_2, window_bounds = array<i64: 384, 128>}]} {
    %c0 = arith.constant 0 : index
    %c0_0 = arith.constant 0 : index
    %0 = vector.load %arg1[%c0, %c0_0] : memref<384x32xbf16, #tpu.memory_space<vmem>>, vector<384x32xbf16>
    %c0_1 = arith.constant 0 : index
    %c0_2 = arith.constant 0 : index
    %1 = vector.load %arg2[%c0_1, %c0_2] : memref<32x128xbf16, #tpu.memory_space<vmem>>, vector<32x128xbf16>
    %cst = arith.constant dense<0.000000e+00> : vector<384x128xf32>
    %2 = tpu.matmul %0, %1, %cst {dimension_numbers = #tpu.dot_dimension_numbers<[1], [0], [0], [1], [0, 0, 1, 1], [], []>} : vector<384x32xbf16>, vector<32x128xbf16>, vector<384x128xf32> -> vector<384x128xf32>
    %cst_3 = arith.constant 0.000000e+00 : f32
    %3 = vector.broadcast %cst_3 : f32 to vector<384x128xf32>
    %4 = arith.maximumf %2, %3 : vector<384x128xf32>
    %5 = arith.truncf %4 : vector<384x128xf32> to vector<384x128xbf16>
    %c0_4 = arith.constant 0 : index
    %c0_5 = arith.constant 0 : index
    %6 = vector.load %arg3[%c0_4, %c0_5] : memref<384x128xbf16, #tpu.memory_space<vmem>>, vector<384x128xbf16>
    tpu.vector_store %arg3[%c0_4, %c0_5], %5 {strides = array<i32>} : memref<384x128xbf16, #tpu.memory_space<vmem>>, vector<384x128xbf16>,
    return
  }
  func.func @transform_0(%arg0: i32) -> (i32, i32) {
    %c0_i32 = arith.constant 0 : i32
    %c0_i32_0 = arith.constant 0 : i32
    return %arg0, %c0_i32 : i32, i32
  }
  func.func @transform_1(%arg0: i32) -> (i32, i32) {
    %c0_i32 = arith.constant 0 : i32
    %c0_i32_0 = arith.constant 0 : i32
    %c0_i32_1 = arith.constant 0 : i32
    return %c0_i32, %c0_i32_0 : i32, i32
  }
  func.func @transform_2(%arg0: i32) -> (i32, i32) {
    %c0_i32 = arith.constant 0 : i32
    %c0_i32_0 = arith.constant 0 : i32
    return %arg0, %c0_i32 : i32, i32
  }
}

module attributes {stable_mosaic.version = 11 : i64} {
  func.func @_decoder_kernel(%arg0: i32, %arg1: memref<8x128xbf16, #tpu.memory_space<vmem>>, %arg2: memref<128x128xbf16, #tpu.memory_space<vmem>>, %arg3: memref<2x128xf32, #tpu.memory_space<vmem>>, %arg4: memref<128x128xbf16, #tpu.memory_space<vmem>>, %arg5: memref<8x128xf32, #tpu.memory_space<vmem>>) attributes {dimension_semantics = [#tpu.dimension_semantics<parallel>], iteration_bounds = array<i64: 1>, scalar_prefetch = 0 : i64, scratch_operands = 0 : i64, tpu.core_type = #tpu.core_type<tc>, window_params = [{transform_indices = @transform_0, window_bounds = array<i64: 8, 128>}, {pipeline_mode = #tpu.pipeline_mode<synchronous>, transform_indices = @transform_1, window_bounds = array<i64: 128, 128>}, {pipeline_mode = #tpu.pipeline_mode<synchronous>, transform_indices = @transform_2, window_bounds = array<i64: 2, 128>}, {pipeline_mode = #tpu.pipeline_mode<synchronous>, transform_indices = @transform_3, window_bounds = array<i64: 128, 128>}, {transform_indices = @transform_4, window_bounds = array<i64: 8, 128>}]} {
    %c0 = arith.constant 0 : index
    %c0_0 = arith.constant 0 : index
    %0 = vector.load %arg3[%c0, %c0_0] : memref<2x128xf32, #tpu.memory_space<vmem>>, vector<2x128xf32>
    %c0_1 = arith.constant 0 : index
    %c0_2 = arith.constant 0 : index
    %1 = vector.load %arg1[%c0_1, %c0_2] : memref<8x128xbf16, #tpu.memory_space<vmem>>, vector<8x128xbf16>
    %c0_3 = arith.constant 0 : index
    %c0_4 = arith.constant 0 : index
    %2 = vector.load %arg2[%c0_3, %c0_4] : memref<128x128xbf16, #tpu.memory_space<vmem>>, vector<128x128xbf16>
    %cst = arith.constant dense<0.000000e+00> : vector<8x128xf32>
    %3 = tpu.matmul %1, %2, %cst {dimension_numbers = #tpu.dot_dimension_numbers<[1], [0], [0], [1], [0, 0, 1, 1], [], []>} : vector<8x128xbf16>, vector<128x128xbf16>, vector<8x128xf32> -> vector<8x128xf32>
    %4 = vector.extract_strided_slice %0 {offsets = [0, 0], sizes = [1, 128], strides = [1, 1]} : vector<2x128xf32> to vector<1x128xf32>
    %5 = vector.broadcast %4 : vector<1x128xf32> to vector<8x128xf32>
    %6 = arith.addf %3, %5 : vector<8x128xf32>
    %cst_5 = arith.constant 0.000000e+00 : f32
    %7 = vector.broadcast %cst_5 : f32 to vector<8x128xf32>
    %8 = arith.maximumf %6, %7 : vector<8x128xf32>
    %9 = arith.truncf %8 : vector<8x128xf32> to vector<8x128xbf16>
    %c0_6 = arith.constant 0 : index
    %c0_7 = arith.constant 0 : index
    %10 = vector.load %arg4[%c0_6, %c0_7] : memref<128x128xbf16, #tpu.memory_space<vmem>>, vector<128x128xbf16>
    %cst_8 = arith.constant dense<0.000000e+00> : vector<8x128xf32>
    %11 = tpu.matmul %9, %10, %cst_8 {dimension_numbers = #tpu.dot_dimension_numbers<[1], [0], [0], [1], [0, 0, 1, 1], [], []>} : vector<8x128xbf16>, vector<128x128xbf16>, vector<8x128xf32> -> vector<8x128xf32>
    %12 = vector.extract_strided_slice %0 {offsets = [1, 0], sizes = [1, 128], strides = [1, 1]} : vector<2x128xf32> to vector<1x128xf32>
    %13 = vector.broadcast %12 : vector<1x128xf32> to vector<8x128xf32>
    %14 = arith.addf %11, %13 : vector<8x128xf32>
    %c0_9 = arith.constant 0 : index
    %c0_10 = arith.constant 0 : index
    %15 = vector.load %arg5[%c0_9, %c0_10] : memref<8x128xf32, #tpu.memory_space<vmem>>, vector<8x128xf32>
    tpu.vector_store %arg5[%c0_9, %c0_10], %14 {strides = array<i32>} : memref<8x128xf32, #tpu.memory_space<vmem>>, vector<8x128xf32>,
    return
  }
  func.func @transform_0(%arg0: i32) -> (i32, i32) {
    %c0_i32 = arith.constant 0 : i32
    %c0_i32_0 = arith.constant 0 : i32
    return %arg0, %c0_i32 : i32, i32
  }
  func.func @transform_1(%arg0: i32) -> (i32, i32) {
    %c0_i32 = arith.constant 0 : i32
    %c0_i32_0 = arith.constant 0 : i32
    %c0_i32_1 = arith.constant 0 : i32
    return %c0_i32, %c0_i32_0 : i32, i32
  }
  func.func @transform_2(%arg0: i32) -> (i32, i32) {
    %c0_i32 = arith.constant 0 : i32
    %c0_i32_0 = arith.constant 0 : i32
    %c0_i32_1 = arith.constant 0 : i32
    return %c0_i32, %c0_i32_0 : i32, i32
  }
  func.func @transform_3(%arg0: i32) -> (i32, i32) {
    %c0_i32 = arith.constant 0 : i32
    %c0_i32_0 = arith.constant 0 : i32
    %c0_i32_1 = arith.constant 0 : i32
    return %c0_i32, %c0_i32_0 : i32, i32
  }
  func.func @transform_4(%arg0: i32) -> (i32, i32) {
    %c0_i32 = arith.constant 0 : i32
    %c0_i32_0 = arith.constant 0 : i32
    return %arg0, %c0_i32 : i32, i32
  }
}

</mosaic_0001>

<bundles_post_ra>
// kernel: sam2_base_forward.3
= control target key start
LH: loop header
LB: loop body
LE: loop exit
PB: predicated region body
PF: predicated region fallthrough
CT: control target
= control target key end

     0   :  { %s344_s1 = inlined_call_operand.vmem [shape: bf16[128,128], index: 1, kind: input, shape index: {}]   ;;  %s345_s3 = inlined_call_operand.vmem [shape: bf16[128,128], index: 3, kind: input, shape index: {}]   ;;  %s346_s0 = inlined_call_operand.vmem [shape: bf16[8,128], index: 0, kind: input, shape index: {}]   ;;  %s347_s2 = inlined_call_operand.vmem [shape: f32[2,128], index: 2, kind: input, shape index: {}]   ;;  %s348_s4 = inlined_call_operand.vmem [shape: f32[8,128], index: 4, kind: output, shape index: {}]  }
   0x1   :  { %v253_v0 = vld [vmem:[%s344_s1 + $0x38] sm:$0xff]  ;;  %v252_v1 = vld [vmem:[%s344_s1 + $0x30] sm:$0xff]  ;;  %v251_v4 = vld [vmem:[%s344_s1 + $0x28] sm:$0xff] }
   0x2   :  { %84 = vmatpush.bf16.msra.mxu0 %v253_v0  ;;  %v261_v2 = vld [vmem:[%s345_s3 + $0x38] sm:$0xff]  ;;  %v260_v3 = vld [vmem:[%s345_s3 + $0x30] sm:$0xff]  ;;  %v259_v5 = vld [vmem:[%s345_s3 + $0x28] sm:$0xff] }
   0x3   :  { %164 = vmatpush.bf16.msra.mxu1 %v261_v2  ;;  %v250_v6 = vld [vmem:[%s344_s1 + $0x20] sm:$0xff]  ;;  %v249_v8 = vld [vmem:[%s344_s1 + $0x18] sm:$0xff]  ;;  %v248_v10 = vld [vmem:[%s344_s1 + $0x10] sm:$0xff] }
   0x4   :  { %v258_v7 = vld [vmem:[%s345_s3 + $0x20] sm:$0xff]  ;;  %v257_v9 = vld [vmem:[%s345_s3 + $0x18] sm:$0xff]  ;;  %v256_v11 = vld [vmem:[%s345_s3 + $0x10] sm:$0xff] }
   0x5   :  { %v247_v12 = vld [vmem:[%s344_s1 + $0x8] sm:$0xff]  ;;  %v246_v13 = vld [vmem:[%s344_s1] sm:$0xff] }
   0x6   :  { %85 = vmatpush.bf16.msra.mxu0 %v252_v1  ;;  %v18_v14 = vld [vmem:[%s346_s0] sm:$0xf]  ;;  %v255_v15 = vld [vmem:[%s345_s3 + $0x8] sm:$0xff] }
   0x7   :  { %165 = vmatpush.bf16.msra.mxu1 %v260_v3  ;;  %v254_v16 = vld [vmem:[%s345_s3] sm:$0xff] }
   0x8   :  { %v17_v17 = vld [vmem:[%s347_s2] sm:$0x3] }
   0x9   :  { %v35_v18 = vperm.slane %v17_v17, 0  ;;  %v115_v24 = vperm.slane %v17_v17, 1 }
   0xa   :  { %86 = vmatpush.bf16.msra.mxu0 %v251_v4 }
   0xb   :  { %166 = vmatpush.bf16.msra.mxu1 %v259_v5 }
   0xe   :  { %87 = vmatpush.bf16.msra.mxu0 %v250_v6 }
   0xf   :  { %167 = vmatpush.bf16.msra.mxu1 %v258_v7 }
  0x12   :  { %88 = vmatpush.bf16.msra.mxu0 %v249_v8 }
  0x13   :  { %168 = vmatpush.bf16.msra.mxu1 %v257_v9 }
  0x16   :  { %89 = vmatpush.bf16.msra.mxu0 %v248_v10 }
  0x17   :  { %169 = vmatpush.bf16.msra.mxu1 %v256_v11 }
  0x1a   :  { %90 = vmatpush.bf16.msra.mxu0 %v247_v12 }
  0x1b   :  { %170 = vmatpush.bf16.msra.mxu1 %v255_v15 }
  0x1e   :  { %91 = vmatpush.bf16.msra.mxu0 %v246_v13 }
  0x1f   :  { %171 = vmatpush.bf16.msra.mxu1 %v254_v16 }
  0x21   :  { %92 = vmatmul.bf16.vlgmr.msra.gmra.mxu0 %v18_v14 }
  0x9e   :  { %v93_v19 = vpop.f32.mrf.mxu0 }
  0x9f   :  { %v94_v20 = vadd.f32 %v93_v19, %v35_v18 }
  0xa1   :  { %v97_v21 = vmax.f32 %v94_v20, 0.0 }
  0xa3   :  { %v98_v22 = vpack.c.bf16 %v97_v21, %v97_v21 }
  0xa5   :  { %172 = vmatmul.bf16.vlgmr.msra.gmra.mxu1 %v98_v22 }
  0xa6   :  { %v95_v23 = vpop.f32.mrf.mxu0 }
 0x122   :  { %v173_v25 = vpop.f32.mrf.mxu1 }
 0x123   :  { %v174_v26 = vadd.f32 %v173_v25, %v115_v24 }
 0x125   :  { %177 = vst [vmem:[%s348_s4] sm:$0xff] %v174_v26 }
 0x12a   :  { %v175_v27 = vpop.f32.mrf.mxu1 }

// kernel: sam2_base_forward.2
= control target key start
LH: loop header
LB: loop body
LE: loop exit
PB: predicated region body
PF: predicated region fallthrough
CT: control target
= control target key end

     0   :  { %s1077_s9 = smov 0   ;;  %s1183_s0 = inlined_call_operand.vmem [shape: bf16[768,32], index: 0, kind: input, shape index: {}]   ;;  %s1184_s1 = inlined_call_operand.vmem [shape: bf16[32,128], index: 1, kind: input, shape index: {}]   ;;  %s1185_s2 = inlined_call_operand.vmem [shape: bf16[768,128], index: 2, kind: output, shape index: {}]  }
   0x1 LB: > { %s734_s10 = sadd.s32 4294967295, %s1060_s9   ;;  %p738_p0 = scmp.ge.s32.totalorder %s1060_s9, 1  ;;  %s1060_s9 = sphi %s1077_s9, %s12_s9  }
   0x2   : > { %p113_p1 = scmp.lt.s32.totalorder %s1060_s9, 3 }
   0x4   : > { %p114_p2 = pnand %p738_p0, %p113_p1 }
   0x5   : > { %s135_s13 = smul.u32 (!%p114_p2), 48, %s734_s10 }
   0x6   : > { %117 = sbr.rel (%p114_p2) target bundleno = 246 (0xf6), region = 28 }
   0x7   : > { %p136_p3 = scmp.lt.s32.totalorder (!%p114_p2), %s135_s13, 95 }
   0xb   : > { %v896_v0 = vld [vmem:[%s1184_s1 + $0x8] sm:$0xff]  ;;  %v895_v1 = vld [vmem:[%s1184_s1] sm:$0xff]  ;;  %s1187_s13 = smov (!%p136_p3, %s135_s13), 95  ;;  %vm332_vm0 = vcmask 261120  }
   0xc   : > { %411 = vmatpush.bf16.msra.mxu0 %v896_v0  ;;  %1040 = vmatpush.bf16.msra.mxu1 %v896_v0  ;;  %s739_s16 = sshll.u32 %s1187_s13, 2 }
   0xd   : > { %1041 = vmatpush.bf16.msra.mxu2 %v896_v0  ;;  %1042 = vmatpush.bf16.msra.mxu3 %v896_v0  ;;  %s1099_s19 = scalar_lea.vmem %s1183_s0, %s739_s16  ;;  %s1154_s22 = scalar_lea.vmem %s1185_s2, %s739_s16 }
   0xe   : > { %v871_v2 = vld [vmem:[%s1099_s19] sm:$0xff]  ;;  %v877_v3 = vld [vmem:[%s1099_s19 + $0x30] sm:$0xff]  ;;  %v872_v6 = vld [vmem:[%s1099_s19 + $0x8] sm:$0xff] }
   0xf   : > { %v883_v4 = vld [vmem:[%s1099_s19 + $0x60] sm:$0xff]  ;;  %v889_v5 = vld [vmem:[%s1099_s19 + $0x90] sm:$0xff]  ;;  %v878_v7 = vld [vmem:[%s1099_s19 + $0x38] sm:$0xff] }
  0x10   : > { %412 = vmatpush.bf16.msra.mxu0 %v895_v1  ;;  %1043 = vmatpush.bf16.msra.mxu1 %v895_v1  ;;  %v884_v8 = vld [vmem:[%s1099_s19 + $0x68] sm:$0xff]  ;;  %v890_v9 = vld [vmem:[%s1099_s19 + $0x98] sm:$0xff]  ;;  %v873_v10 = vld [vmem:[%s1099_s19 + $0x10] sm:$0xff] }
  0x11   : > { %1044 = vmatpush.bf16.msra.mxu2 %v895_v1  ;;  %1045 = vmatpush.bf16.msra.mxu3 %v895_v1  ;;  %v879_v11 = vld [vmem:[%s1099_s19 + $0x40] sm:$0xff]  ;;  %v885_v12 = vld [vmem:[%s1099_s19 + $0x70] sm:$0xff]  ;;  %v874_v14 = vld [vmem:[%s1099_s19 + $0x18] sm:$0xff] }
  0x12   : > { %v891_v13 = vld [vmem:[%s1099_s19 + $0xa0] sm:$0xff]  ;;  %v880_v15 = vld [vmem:[%s1099_s19 + $0x48] sm:$0xff]  ;;  %v886_v16 = vld [vmem:[%s1099_s19 + $0x78] sm:$0xff] }
  0x13   : > { %845 = vmatmul.msk.bf16.vlgmr.msra.gmra.mxu0 %vm332_vm0, %v871_v2  ;;  %851 = vmatmul.msk.bf16.vlgmr.msra.gmra.mxu1 %vm332_vm0, %v877_v3  ;;  %v892_v17 = vld [vmem:[%s1099_s19 + $0xa8] sm:$0xff]  ;;  %v875_v18 = vld [vmem:[%s1099_s19 + $0x20] sm:$0xff]  ;;  %v881_v19 = vld [vmem:[%s1099_s19 + $0x50] sm:$0xff] }
  0x14   : > { %857 = vmatmul.msk.bf16.vlgmr.msra.gmra.mxu2 %vm332_vm0, %v883_v4  ;;  %863 = vmatmul.msk.bf16.vlgmr.msra.gmra.mxu3 %vm332_vm0, %v889_v5  ;;  %v887_v20 = vld [vmem:[%s1099_s19 + $0x80] sm:$0xff]  ;;  %v893_v21 = vld [vmem:[%s1099_s19 + $0xb0] sm:$0xff]  ;;  %v876_v22 = vld [vmem:[%s1099_s19 + $0x28] sm:$0xff] }
  0x15   : > { %v882_v23 = vld [vmem:[%s1099_s19 + $0x58] sm:$0xff]  ;;  %v888_v24 = vld [vmem:[%s1099_s19 + $0x88] sm:$0xff] }
  0x16   : > { %v894_v25 = vld [vmem:[%s1099_s19 + $0xb8] sm:$0xff] }
  0x23   : > { %846 = vmatmul.msk.bf16.gmra.mxu0 %vm332_vm0, %v872_v6  ;;  %852 = vmatmul.msk.bf16.gmra.mxu1 %vm332_vm0, %v878_v7 }
  0x24   : > { %858 = vmatmul.msk.bf16.gmra.mxu2 %vm332_vm0, %v884_v8  ;;  %864 = vmatmul.msk.bf16.gmra.mxu3 %vm332_vm0, %v890_v9 }
  0x33   : > { %847 = vmatmul.msk.bf16.gmra.mxu0 %vm332_vm0, %v873_v10  ;;  %853 = vmatmul.msk.bf16.gmra.mxu1 %vm332_vm0, %v879_v11 }
  0x34   : > { %859 = vmatmul.msk.bf16.gmra.mxu2 %vm332_vm0, %v885_v12  ;;  %865 = vmatmul.msk.bf16.gmra.mxu3 %vm332_vm0, %v891_v13 }
  0x43   : > { %848 = vmatmul.msk.bf16.gmra.mxu0 %vm332_vm0, %v874_v14  ;;  %854 = vmatmul.msk.bf16.gmra.mxu1 %vm332_vm0, %v880_v15 }
  0x44   : > { %860 = vmatmul.msk.bf16.gmra.mxu2 %vm332_vm0, %v886_v16  ;;  %866 = vmatmul.msk.bf16.gmra.mxu3 %vm332_vm0, %v892_v17 }
  0x53   : > { %849 = vmatmul.msk.bf16.gmra.mxu0 %vm332_vm0, %v875_v18  ;;  %855 = vmatmul.msk.bf16.gmra.mxu1 %vm332_vm0, %v881_v19 }
  0x54   : > { %861 = vmatmul.msk.bf16.gmra.mxu2 %vm332_vm0, %v887_v20  ;;  %867 = vmatmul.msk.bf16.gmra.mxu3 %vm332_vm0, %v893_v21 }
  0x63   : > { %850 = vmatmul.msk.bf16.gmra.mxu0 %vm332_vm0, %v876_v22  ;;  %856 = vmatmul.msk.bf16.gmra.mxu1 %vm332_vm0, %v882_v23 }
  0x64   : > { %862 = vmatmul.msk.bf16.gmra.mxu2 %vm332_vm0, %v888_v24  ;;  %868 = vmatmul.msk.bf16.gmra.mxu3 %vm332_vm0, %v894_v25 }
  0x90   : > { %v414_v26 = vpop.f32.mrf.mxu0  ;;  %v444_v27 = vpop.f32.mrf.mxu1 }
  0x91   : > { %v534_v32 = vmax.f32 %v414_v26, 0.0  ;;  %v546_v33 = vmax.f32 %v444_v27, 0.0 }
  0x97   : > { %v474_v28 = vpop.f32.mrf.mxu2  ;;  %v504_v29 = vpop.f32.mrf.mxu3 }
  0x98   : > { %v416_v30 = vpop.f32.mrf.mxu0  ;;  %v446_v31 = vpop.f32.mrf.mxu1  ;;  %v558_v40 = vmax.f32 %v474_v28, 0.0  ;;  %v570_v41 = vmax.f32 %v504_v29, 0.0 }
  0x99   : > { %v535_v34 = vmax.f32 %v416_v30, 0.0  ;;  %v547_v35 = vmax.f32 %v446_v31, 0.0 }
  0x9b   : > { %v900_v36 = vpack.c.bf16 %v535_v34, %v534_v32  ;;  %v930_v37 = vpack.c.bf16 %v547_v35, %v546_v33 }
  0x9d   : > { %901 = vst [vmem:[%s1154_s22] sm:$0xff] %v900_v36  }
  0x9e   : > { %1022 = vst [vmem:[%s1154_s22 + $0x30] sm:$0xff] %v930_v37  }
  0x9f   : > { %v476_v38 = vpop.f32.mrf.mxu2  ;;  %v506_v39 = vpop.f32.mrf.mxu3 }
  0xa0   : > { %v559_v42 = vmax.f32 %v476_v38, 0.0  ;;  %v571_v43 = vmax.f32 %v506_v39, 0.0  ;;  %v419_v44 = vpop.f32.mrf.mxu0  ;;  %v449_v45 = vpop.f32.mrf.mxu1 }
  0xa1   : > { %v536_v52 = vmax.f32 %v419_v44, 0.0  ;;  %v548_v53 = vmax.f32 %v449_v45, 0.0 }
  0xa2   : > { %v960_v46 = vpack.c.bf16 %v559_v42, %v558_v40  ;;  %v990_v47 = vpack.c.bf16 %v571_v43, %v570_v41 }
  0xa4   : > { %1028 = vst [vmem:[%s1154_s22 + $0x60] sm:$0xff] %v960_v46  }
  0xa5   : > { %1034 = vst [vmem:[%s1154_s22 + $0x90] sm:$0xff] %v990_v47  }
  0xa7   : > { %v479_v48 = vpop.f32.mrf.mxu2  ;;  %v509_v49 = vpop.f32.mrf.mxu3 }
  0xa8   : > { %v421_v50 = vpop.f32.mrf.mxu0  ;;  %v451_v51 = vpop.f32.mrf.mxu1  ;;  %v560_v60 = vmax.f32 %v479_v48, 0.0  ;;  %v572_v61 = vmax.f32 %v509_v49, 0.0 }
  0xa9   : > { %v537_v54 = vmax.f32 %v421_v50, 0.0  ;;  %v549_v55 = vmax.f32 %v451_v51, 0.0 }
  0xab   : > { %v905_v56 = vpack.c.bf16 %v537_v54, %v536_v52  ;;  %v935_v57 = vpack.c.bf16 %v549_v55, %v548_v53 }
  0xad   : > { %1017 = vst [vmem:[%s1154_s22 + $0x8] sm:$0xff] %v905_v56  }
  0xae   : > { %1023 = vst [vmem:[%s1154_s22 + $0x38] sm:$0xff] %v935_v57  }
  0xaf   : > { %v481_v58 = vpop.f32.mrf.mxu2  ;;  %v511_v59 = vpop.f32.mrf.mxu3 }
  0xb0   : > { %v561_v62 = vmax.f32 %v481_v58, 0.0  ;;  %v573_v63 = vmax.f32 %v511_v59, 0.0  ;;  %v424_v0 = vpop.f32.mrf.mxu0  ;;  %v454_v1 = vpop.f32.mrf.mxu1 }
  0xb1   : > { %v538_v8 = vmax.f32 %v424_v0, 0.0  ;;  %v550_v9 = vmax.f32 %v454_v1, 0.0 }
  0xb2   : > { %v965_v2 = vpack.c.bf16 %v561_v62, %v560_v60  ;;  %v995_v3 = vpack.c.bf16 %v573_v63, %v572_v61 }
  0xb4   : > { %1029 = vst [vmem:[%s1154_s22 + $0x68] sm:$0xff] %v965_v2  }
  0xb5   : > { %1035 = vst [vmem:[%s1154_s22 + $0x98] sm:$0xff] %v995_v3  }
  0xb7   : > { %v484_v4 = vpop.f32.mrf.mxu2  ;;  %v514_v5 = vpop.f32.mrf.mxu3 }
  0xb8   : > { %v426_v6 = vpop.f32.mrf.mxu0  ;;  %v456_v7 = vpop.f32.mrf.mxu1  ;;  %v562_v16 = vmax.f32 %v484_v4, 0.0  ;;  %v574_v17 = vmax.f32 %v514_v5, 0.0 }
  0xb9   : > { %v539_v10 = vmax.f32 %v426_v6, 0.0  ;;  %v551_v11 = vmax.f32 %v456_v7, 0.0 }
  0xbb   : > { %v910_v12 = vpack.c.bf16 %v539_v10, %v538_v8  ;;  %v940_v13 = vpack.c.bf16 %v551_v11, %v550_v9 }
  0xbd   : > { %1018 = vst [vmem:[%s1154_s22 + $0x10] sm:$0xff] %v910_v12  }
  0xbe   : > { %1024 = vst [vmem:[%s1154_s22 + $0x40] sm:$0xff] %v940_v13  }
  0xbf   : > { %v486_v14 = vpop.f32.mrf.mxu2  ;;  %v516_v15 = vpop.f32.mrf.mxu3 }
  0xc0   : > { %v563_v18 = vmax.f32 %v486_v14, 0.0  ;;  %v575_v19 = vmax.f32 %v516_v15, 0.0  ;;  %v429_v20 = vpop.f32.mrf.mxu0  ;;  %v459_v21 = vpop.f32.mrf.mxu1 }
  0xc1   : > { %v540_v28 = vmax.f32 %v429_v20, 0.0  ;;  %v552_v29 = vmax.f32 %v459_v21, 0.0 }
  0xc2   : > { %v970_v22 = vpack.c.bf16 %v563_v18, %v562_v16  ;;  %v1000_v23 = vpack.c.bf16 %v575_v19, %v574_v17 }
  0xc4   : > { %1030 = vst [vmem:[%s1154_s22 + $0x70] sm:$0xff] %v970_v22  }
  0xc5   : > { %1036 = vst [vmem:[%s1154_s22 + $0xa0] sm:$0xff] %v1000_v23  }
  0xc7   : > { %v489_v24 = vpop.f32.mrf.mxu2  ;;  %v519_v25 = vpop.f32.mrf.mxu3 }
  0xc8   : > { %v431_v26 = vpop.f32.mrf.mxu0  ;;  %v461_v27 = vpop.f32.mrf.mxu1  ;;  %v564_v36 = vmax.f32 %v489_v24, 0.0  ;;  %v576_v37 = vmax.f32 %v519_v25, 0.0 }
  0xc9   : > { %v541_v30 = vmax.f32 %v431_v26, 0.0  ;;  %v553_v31 = vmax.f32 %v461_v27, 0.0 }
  0xcb   : > { %v915_v32 = vpack.c.bf16 %v541_v30, %v540_v28  ;;  %v945_v33 = vpack.c.bf16 %v553_v31, %v552_v29 }
  0xcd   : > { %1019 = vst [vmem:[%s1154_s22 + $0x18] sm:$0xff] %v915_v32  }
  0xce   : > { %1025 = vst [vmem:[%s1154_s22 + $0x48] sm:$0xff] %v945_v33  }
  0xcf   : > { %v491_v34 = vpop.f32.mrf.mxu2  ;;  %v521_v35 = vpop.f32.mrf.mxu3 }
  0xd0   : > { %v565_v38 = vmax.f32 %v491_v34, 0.0  ;;  %v577_v39 = vmax.f32 %v521_v35, 0.0  ;;  %v434_v40 = vpop.f32.mrf.mxu0  ;;  %v464_v41 = vpop.f32.mrf.mxu1 }
  0xd1   : > { %v542_v48 = vmax.f32 %v434_v40, 0.0  ;;  %v554_v49 = vmax.f32 %v464_v41, 0.0 }
  0xd2   : > { %v975_v42 = vpack.c.bf16 %v565_v38, %v564_v36  ;;  %v1005_v43 = vpack.c.bf16 %v577_v39, %v576_v37 }
  0xd4   : > { %1031 = vst [vmem:[%s1154_s22 + $0x78] sm:$0xff] %v975_v42  }
  0xd5   : > { %1037 = vst [vmem:[%s1154_s22 + $0xa8] sm:$0xff] %v1005_v43  }
  0xd7   : > { %v494_v44 = vpop.f32.mrf.mxu2  ;;  %v524_v45 = vpop.f32.mrf.mxu3 }
  0xd8   : > { %v436_v46 = vpop.f32.mrf.mxu0  ;;  %v466_v47 = vpop.f32.mrf.mxu1  ;;  %v566_v56 = vmax.f32 %v494_v44, 0.0  ;;  %v578_v57 = vmax.f32 %v524_v45, 0.0 }
  0xd9   : > { %v543_v50 = vmax.f32 %v436_v46, 0.0  ;;  %v555_v51 = vmax.f32 %v466_v47, 0.0 }
  0xdb   : > { %v920_v52 = vpack.c.bf16 %v543_v50, %v542_v48  ;;  %v950_v53 = vpack.c.bf16 %v555_v51, %v554_v49 }
  0xdd   : > { %1020 = vst [vmem:[%s1154_s22 + $0x20] sm:$0xff] %v920_v52  }
  0xde   : > { %1026 = vst [vmem:[%s1154_s22 + $0x50] sm:$0xff] %v950_v53  }
  0xdf   : > { %v496_v54 = vpop.f32.mrf.mxu2  ;;  %v526_v55 = vpop.f32.mrf.mxu3 }
  0xe0   : > { %v567_v58 = vmax.f32 %v496_v54, 0.0  ;;  %v579_v59 = vmax.f32 %v526_v55, 0.0  ;;  %v439_v60 = vpop.f32.mrf.mxu0  ;;  %v469_v61 = vpop.f32.mrf.mxu1 }
  0xe1   : > { %v544_v4 = vmax.f32 %v439_v60, 0.0  ;;  %v556_v5 = vmax.f32 %v469_v61, 0.0 }
  0xe2   : > { %v980_v62 = vpack.c.bf16 %v567_v58, %v566_v56  ;;  %v1010_v63 = vpack.c.bf16 %v579_v59, %v578_v57 }
  0xe4   : > { %1032 = vst [vmem:[%s1154_s22 + $0x80] sm:$0xff] %v980_v62  }
  0xe5   : > { %1038 = vst [vmem:[%s1154_s22 + $0xb0] sm:$0xff] %v1010_v63  }
  0xe7   : > { %v499_v0 = vpop.f32.mrf.mxu2  ;;  %v529_v1 = vpop.f32.mrf.mxu3 }
  0xe8   : > { %v441_v2 = vpop.f32.mrf.mxu0  ;;  %v471_v3 = vpop.f32.mrf.mxu1  ;;  %v568_v12 = vmax.f32 %v499_v0, 0.0  ;;  %v580_v13 = vmax.f32 %v529_v1, 0.0 }
  0xe9   : > { %v545_v6 = vmax.f32 %v441_v2, 0.0  ;;  %v557_v7 = vmax.f32 %v471_v3, 0.0 }
  0xeb   : > { %v925_v8 = vpack.c.bf16 %v545_v6, %v544_v4  ;;  %v955_v9 = vpack.c.bf16 %v557_v7, %v556_v5 }
  0xed   : > { %1021 = vst [vmem:[%s1154_s22 + $0x28] sm:$0xff] %v925_v8  }
  0xee   : > { %1027 = vst [vmem:[%s1154_s22 + $0x58] sm:$0xff] %v955_v9  }
  0xef   : > { %v501_v10 = vpop.f32.mrf.mxu2  ;;  %v531_v11 = vpop.f32.mrf.mxu3 }
  0xf0   : > { %v569_v14 = vmax.f32 %v501_v10, 0.0  ;;  %v581_v15 = vmax.f32 %v531_v11, 0.0 }
  0xf2   : > { %v985_v16 = vpack.c.bf16 %v569_v14, %v568_v12  ;;  %v1015_v17 = vpack.c.bf16 %v581_v15, %v580_v13 }
  0xf4   : > { %1033 = vst [vmem:[%s1154_s22 + $0x88] sm:$0xff] %v985_v16  }
  0xf5   : > { %1039 = vst [vmem:[%s1154_s22 + $0xb8] sm:$0xff] %v1015_v17  }
  0xf6 PF: > { %s12_s9 = sadd.s32 1, %s1060_s9  }
  0xf7   : > { %p9_p4 = scmp.ge.s32.totalorder %s12_s9, 4  }
  0xf9   :  { %11 = sbr.rel (!%p9_p4) target bundleno = 1 (0x1), region = 58 }

</bundles_post_ra>
